<compile_context>
chip_gen: v5e
topology: v5e:2x2
jax: 0.10.0
libtpu: 0.0.40
codegen_flags: <defaults>
</compile_context>

<pallas_src>
import functools

import jax
import jax.numpy as jnp
from jax.experimental import pallas as pl
from jax.experimental.pallas import tpu as pltpu

N_OUT = 128            # lane-dense output slab width (col 0 = q1, col 1 = q2)
W_DTYPE = jnp.bfloat16  # storage dtype for packed weights (MXU-native)


def _round_up(n, m):
    return (n + m - 1) // m * m


# ----------------------------------------------------------------------------
# Packed-parameter layout
# ----------------------------------------------------------------------------
def _pack_layout(state_dim, action_dim, hidden_dim):
    """16-aligned row offsets of each weight segment + packed buffer shape."""
    h2 = 2 * hidden_dim
    k1 = _round_up(state_dim + action_dim, 16)   # layer-1 rows (x||a, both heads)
    off2 = k1                                    # blockdiag(w2, w4) -> [2H, 2H]
    offo = off2 + _round_up(h2, 16)              # output block      -> [2H, 128]
    rows = offo + _round_up(h2, 16)
    cols = max(h2, N_OUT)
    return k1, off2, offo, rows, cols


def pack_qvalue_params(params, state_dim, hidden_dim, action_dim):
    """Pack the 12 Linear tensors into one bf16 weight buffer + one f32 bias buffer."""
    S, A, H = state_dim, action_dim, hidden_dim
    H2 = 2 * H
    k1, off2, offo, rows, cols = _pack_layout(S, A, H)

    wpack = jnp.zeros((rows, cols), W_DTYPE)
    # layer 1: heads merged along columns; rows = [x-part ; a-part] (fused concat)
    w1m = jnp.concatenate([params["w1"], params["w3"]], axis=1)        # [S+A, 2H]
    wpack = wpack.at[0:S + A, 0:H2].set(w1m.astype(W_DTYPE))
    # layer 2: block-diagonal of w2 / w4
    wpack = wpack.at[off2:off2 + H, 0:H].set(params["w2"].astype(W_DTYPE))
    wpack = wpack.at[off2 + H:off2 + H2, H:H2].set(params["w4"].astype(W_DTYPE))
    # output layer: wo1 -> column 0 (rows 0:H), wo2 -> column 1 (rows H:2H)
    wpack = wpack.at[offo:offo + H, 0:1].set(params["wo1"].astype(W_DTYPE))
    wpack = wpack.at[offo + H:offo + H2, 1:2].set(params["wo2"].astype(W_DTYPE))

    bpack = jnp.zeros((3, cols), jnp.float32)
    bpack = bpack.at[0, 0:H].set(params["b1"][0]).at[0, H:H2].set(params["b3"][0])
    bpack = bpack.at[1, 0:H].set(params["b2"][0]).at[1, H:H2].set(params["b4"][0])
    bpack = bpack.at[2, 0].set(params["bo1"][0, 0]).at[2, 1].set(params["bo2"][0, 0])
    return {"wpack": wpack, "bpack": bpack}


# ----------------------------------------------------------------------------
# Kernel
# ----------------------------------------------------------------------------
def _qvalue_kernel(x_ref, a_ref, w_ref, b_ref, q_ref, cat_ref, *,
                   S, A, H2, k1, off2, offo):
    # fused concat: x || a -> bf16 scratch (single layer-1 MXU push, K = k1)
    cat_ref[...] = jnp.zeros_like(cat_ref)              # zero the padding columns
    cat_ref[:, 0:S] = x_ref[...].astype(W_DTYPE)
    cat_ref[:, S:S + A] = a_ref[...].astype(W_DTYPE)

    # static, 16-aligned slices of the single packed (bf16) weight buffer
    w1 = w_ref[0:k1, 0:H2]                 # [K1, 2H]  layer 1 (q1 | q2)
    w2 = w_ref[off2:off2 + H2, 0:H2]       # [2H, 2H]  blockdiag(w2, w4)
    wo = w_ref[offo:offo + H2, 0:N_OUT]    # [2H, 128] col 0 = wo1, col 1 = wo2
    b1 = b_ref[0:1, 0:H2]                  # [1, 2H]
    b2 = b_ref[1:2, 0:H2]
    bo = b_ref[2:3, 0:N_OUT]               # bo1 @ col 0, bo2 @ col 1, zeros else

    # layer 1 (both heads at once), f32 accumulation on the MXU
    h = jnp.dot(cat_ref[...], w1, preferred_element_type=jnp.float32)
    h = jnp.maximum(h + b1, 0.0)

    # layer 2: block-diagonal -> both heads in one matmul
    h = jnp.dot(h.astype(W_DTYPE), w2, preferred_element_type=jnp.float32)
    h = jnp.maximum(h + b2, 0.0)

    # output layer: lane-dense [B, 128] slab; col 0 = q1, col 1 = q2
    q = jnp.dot(h.astype(W_DTYPE), wo, preferred_element_type=jnp.float32)
    q_ref[...] = q + bo


# ----------------------------------------------------------------------------
# Wrapper
# ----------------------------------------------------------------------------
@functools.partial(jax.jit,
                   static_argnames=("state_dim", "action_dim", "hidden_dim"))
def qvalue_net_forward(x, a, wpack, bpack, *, state_dim, action_dim, hidden_dim):
    """Twin-Q forward: returns (q1, q2), each [B, 1]."""
    S, A, H = state_dim, action_dim, hidden_dim
    H2 = 2 * H
    k1, off2, offo, _, _ = _pack_layout(S, A, H)
    B = x.shape[0]

    # Batch tiling: tiny batches run as one block; otherwise split into >= 2
    # blocks (so both v7x TensorCores engage) capped at 1024 rows so single-TC
    # v5e/v6e only pay a few grid-step overheads.
    if B <= 8:
        block_b = B
    else:
        block_b = min(1024, _round_up(pl.cdiv(B, 2), 8))
    grid = (pl.cdiv(B, block_b),)

    kernel = functools.partial(_qvalue_kernel, S=S, A=A, H2=H2,
                               k1=k1, off2=off2, offo=offo)

    out = pl.pallas_call(
        kernel,
        out_shape=jax.ShapeDtypeStruct((B, N_OUT), jnp.float32),
        grid=grid,
        in_specs=[
            pl.BlockSpec((block_b, S), lambda i: (i, 0)),    # x
            pl.BlockSpec((block_b, A), lambda i: (i, 0)),    # a
            pl.BlockSpec(wpack.shape, lambda i: (0, 0)),     # packed weights (bf16)
            pl.BlockSpec(bpack.shape, lambda i: (0, 0)),     # packed biases (f32)
        ],
        out_specs=pl.BlockSpec((block_b, N_OUT), lambda i: (i, 0)),
        scratch_shapes=[pltpu.VMEM((block_b, k1), W_DTYPE)],  # fused-concat buffer
        compiler_params=pltpu.CompilerParams(
            dimension_semantics=("parallel",)),
    )(x, a, wpack, bpack)

    q1 = out[:, 0:1]
    q2 = out[:, 1:2]
    return q1, q2


# ----------------------------------------------------------------------------
# Param init (PyTorch nn.Linear default: U[-1/sqrt(fan_in), +1/sqrt(fan_in)])
# ----------------------------------------------------------------------------
def init_qvalue_params(key, state_dim, hidden_dim, action_dim):
    d_in = state_dim + action_dim

    def linear(key, fan_in, fan_out):
        kw, kb = jax.random.split(key)
        bound = 1.0 / jnp.sqrt(jnp.float32(fan_in))
        # stored as [in, out] so forward is x @ W + b
        w = jax.random.uniform(kw, (fan_in, fan_out), jnp.float32, -bound, bound)
        b = jax.random.uniform(kb, (1, fan_out), jnp.float32, -bound, bound)
        return w, b

    keys = jax.random.split(key, 6)
    w1, b1 = linear(keys[0], d_in, hidden_dim)         # fc1
    w2, b2 = linear(keys[1], hidden_dim, hidden_dim)   # fc2
    wo1, bo1 = linear(keys[2], hidden_dim, 1)          # fc_out1
    w3, b3 = linear(keys[3], d_in, hidden_dim)         # fc3
    w4, b4 = linear(keys[4], hidden_dim, hidden_dim)   # fc4
    wo2, bo2 = linear(keys[5], hidden_dim, 1)          # fc_out2
    return dict(w1=w1, b1=b1, w2=w2, b2=b2, wo1=wo1, bo1=bo1,
                w3=w3, b3=b3, w4=w4, b4=b4, wo2=wo2, bo2=bo2)


def _reference_forward(x, a, p, w_dtype=jnp.float32):
    # optional weight rounding to match the kernel's bf16 weight storage
    q = lambda w: w.astype(w_dtype).astype(jnp.float32)
    cat = jnp.concatenate([x, a], axis=1)
    h1 = jax.nn.relu(cat @ q(p["w1"]) + p["b1"])
    h1 = jax.nn.relu(h1 @ q(p["w2"]) + p["b2"])
    q1 = h1 @ q(p["wo1"]) + p["bo1"]
    h2 = jax.nn.relu(cat @ q(p["w3"]) + p["b3"])
    h2 = jax.nn.relu(h2 @ q(p["w4"]) + p["b4"])
    q2 = h2 @ q(p["wo2"]) + p["bo2"]
    return q1, q2


if __name__ == "__main__":
    state_dim, action_dim, hidden_dim, batch = 16, 4, 32, 2

    key = jax.random.PRNGKey(0)
    k_params, k_x, k_a = jax.random.split(key, 3)

    params = init_qvalue_params(k_params, state_dim, hidden_dim, action_dim)
    packed = pack_qvalue_params(params, state_dim, hidden_dim, action_dim)

    x = jax.random.normal(k_x, (batch, state_dim), jnp.float32)
    a = jax.random.normal(k_a, (batch, action_dim), jnp.float32)

    q1, q2 = qvalue_net_forward(x, a, packed["wpack"], packed["bpack"],
                                state_dim=state_dim, action_dim=action_dim,
                                hidden_dim=hidden_dim)
    jax.block_until_ready((q1, q2))

    # sanity check against a pure-JAX reference (weights rounded to bf16 to
    # mirror the kernel's stored-weight precision; activations stay f32).
    q1_ref, q2_ref = _reference_forward(x, a, params, w_dtype=jnp.bfloat16)
    assert q1.shape == (batch, 1) and q2.shape == (batch, 1)
    assert jnp.allclose(q1, q1_ref, atol=2e-2, rtol=2e-2)
    assert jnp.allclose(q2, q2_ref, atol=2e-2, rtol=2e-2)

    print("KERNEL_OK")
</pallas_src>

<mosaic_0001>
module attributes {stable_mosaic.version = 11 : i64} {
  func.func @_qvalue_kernel(%arg0: i32, %arg1: memref<2x16xf32, #tpu.memory_space<vmem>>, %arg2: memref<2x4xf32, #tpu.memory_space<vmem>>, %arg3: memref<160x128xbf16, #tpu.memory_space<vmem>>, %arg4: memref<3x128xf32, #tpu.memory_space<vmem>>, %arg5: memref<2x128xf32, #tpu.memory_space<vmem>>, %arg6: memref<2x32xbf16, #tpu.memory_space<vmem>>) attributes {dimension_semantics = [#tpu.dimension_semantics<parallel>], iteration_bounds = array<i64: 1>, scalar_prefetch = 0 : i64, scratch_operands = 1 : i64, tpu.core_type = #tpu.core_type<tc>, window_params = [{transform_indices = @transform_0, window_bounds = array<i64: 2, 16>}, {transform_indices = @transform_1, window_bounds = array<i64: 2, 4>}, {pipeline_mode = #tpu.pipeline_mode<synchronous>, transform_indices = @transform_2, window_bounds = array<i64: 160, 128>}, {pipeline_mode = #tpu.pipeline_mode<synchronous>, transform_indices = @transform_3, window_bounds = array<i64: 3, 128>}, {transform_indices = @transform_4, window_bounds = array<i64: 2, 128>}]} {
    %cst = arith.constant 0.000000e+00 : bf16
    %0 = vector.broadcast %cst : bf16 to vector<2x32xbf16>
    %c0 = arith.constant 0 : index
    %c0_0 = arith.constant 0 : index
    %1 = vector.load %arg6[%c0, %c0_0] : memref<2x32xbf16, #tpu.memory_space<vmem>>, vector<2x32xbf16>
    tpu.vector_store %arg6[%c0, %c0_0], %0 {strides = array<i32>} : memref<2x32xbf16, #tpu.memory_space<vmem>>, vector<2x32xbf16>,
    %c0_1 = arith.constant 0 : index
    %c0_2 = arith.constant 0 : index
    %2 = vector.load %arg1[%c0_1, %c0_2] : memref<2x16xf32, #tpu.memory_space<vmem>>, vector<2x16xf32>
    %3 = arith.truncf %2 : vector<2x16xf32> to vector<2x16xbf16>
    %c0_3 = arith.constant 0 : index
    %c0_4 = arith.constant 0 : index
    %4 = vector.load %arg6[%c0_3, %c0_4] : memref<2x32xbf16, #tpu.memory_space<vmem>>, vector<2x16xbf16>
    tpu.vector_store %arg6[%c0_3, %c0_4], %3 {strides = array<i32>} : memref<2x32xbf16, #tpu.memory_space<vmem>>, vector<2x16xbf16>,
    %c0_5 = arith.constant 0 : index
    %c0_6 = arith.constant 0 : index
    %5 = vector.load %arg2[%c0_5, %c0_6] : memref<2x4xf32, #tpu.memory_space<vmem>>, vector<2x4xf32>
    %6 = arith.truncf %5 : vector<2x4xf32> to vector<2x4xbf16>
    %c0_7 = arith.constant 0 : index
    %c16 = arith.constant 16 : index
    %7 = vector.load %arg6[%c0_7, %c16] : memref<2x32xbf16, #tpu.memory_space<vmem>>, vector<2x4xbf16>
    tpu.vector_store %arg6[%c0_7, %c16], %6 {strides = array<i32>} : memref<2x32xbf16, #tpu.memory_space<vmem>>, vector<2x4xbf16>,
    %c0_8 = arith.constant 0 : index
    %c0_9 = arith.constant 0 : index
    %8 = vector.load %arg3[%c0_8, %c0_9] : memref<160x128xbf16, #tpu.memory_space<vmem>>, vector<32x64xbf16>
    %c32 = arith.constant 32 : index
    %c0_10 = arith.constant 0 : index
    %9 = vector.load %arg3[%c32, %c0_10] : memref<160x128xbf16, #tpu.memory_space<vmem>>, vector<64x64xbf16>
    %c96 = arith.constant 96 : index
    %c0_11 = arith.constant 0 : index
    %10 = vector.load %arg3[%c96, %c0_11] : memref<160x128xbf16, #tpu.memory_space<vmem>>, vector<64x128xbf16>
    %c0_12 = arith.constant 0 : index
    %c0_13 = arith.constant 0 : index
    %11 = vector.load %arg4[%c0_12, %c0_13] : memref<3x128xf32, #tpu.memory_space<vmem>>, vector<1x64xf32>
    %c1 = arith.constant 1 : index
    %c0_14 = arith.constant 0 : index
    %12 = vector.load %arg4[%c1, %c0_14] : memref<3x128xf32, #tpu.memory_space<vmem>>, vector<1x64xf32>
    %c2 = arith.constant 2 : index
    %c0_15 = arith.constant 0 : index
    %13 = vector.load %arg4[%c2, %c0_15] : memref<3x128xf32, #tpu.memory_space<vmem>>, vector<1x128xf32>
    %c0_16 = arith.constant 0 : index
    %c0_17 = arith.constant 0 : index
    %14 = vector.load %arg6[%c0_16, %c0_17] : memref<2x32xbf16, #tpu.memory_space<vmem>>, vector<2x32xbf16>
    %cst_18 = arith.constant dense<0.000000e+00> : vector<2x64xf32>
    %15 = tpu.matmul %14, %8, %cst_18 {dimension_numbers = #tpu.dot_dimension_numbers<[1], [0], [0], [1], [0, 0, 1, 1], [], []>} : vector<2x32xbf16>, vector<32x64xbf16>, vector<2x64xf32> -> vector<2x64xf32>
    %16 = vector.broadcast %11 : vector<1x64xf32> to vector<2x64xf32>
    %17 = arith.addf %15, %16 : vector<2x64xf32>
    %cst_19 = arith.constant 0.000000e+00 : f32
    %18 = vector.broadcast %cst_19 : f32 to vector<2x64xf32>
    %19 = arith.maximumf %17, %18 : vector<2x64xf32>
    %20 = arith.truncf %19 : vector<2x64xf32> to vector<2x64xbf16>
    %cst_20 = arith.constant dense<0.000000e+00> : vector<2x64xf32>
    %21 = tpu.matmul %20, %9, %cst_20 {dimension_numbers = #tpu.dot_dimension_numbers<[1], [0], [0], [1], [0, 0, 1, 1], [], []>} : vector<2x64xbf16>, vector<64x64xbf16>, vector<2x64xf32> -> vector<2x64xf32>
    %22 = vector.broadcast %12 : vector<1x64xf32> to vector<2x64xf32>
    %23 = arith.addf %21, %22 : vector<2x64xf32>
    %cst_21 = arith.constant 0.000000e+00 : f32
    %24 = vector.broadcast %cst_21 : f32 to vector<2x64xf32>
    %25 = arith.maximumf %23, %24 : vector<2x64xf32>
    %26 = arith.truncf %25 : vector<2x64xf32> to vector<2x64xbf16>
    %cst_22 = arith.constant dense<0.000000e+00> : vector<2x128xf32>
    %27 = tpu.matmul %26, %10, %cst_22 {dimension_numbers = #tpu.dot_dimension_numbers<[1], [0], [0], [1], [0, 0, 1, 1], [], []>} : vector<2x64xbf16>, vector<64x128xbf16>, vector<2x128xf32> -> vector<2x128xf32>
    %28 = vector.broadcast %13 : vector<1x128xf32> to vector<2x128xf32>
    %29 = arith.addf %27, %28 : vector<2x128xf32>
    %c0_23 = arith.constant 0 : index
    %c0_24 = arith.constant 0 : index
    %30 = vector.load %arg5[%c0_23, %c0_24] : memref<2x128xf32, #tpu.memory_space<vmem>>, vector<2x128xf32>
    tpu.vector_store %arg5[%c0_23, %c0_24], %29 {strides = array<i32>} : memref<2x128xf32, #tpu.memory_space<vmem>>, vector<2x128xf32>,
    return
  }
  func.func @transform_0(%arg0: i32) -> (i32, i32) {
    %c0_i32 = arith.constant 0 : i32
    %c0_i32_0 = arith.constant 0 : i32
    return %arg0, %c0_i32 : i32, i32
  }
  func.func @transform_1(%arg0: i32) -> (i32, i32) {
    %c0_i32 = arith.constant 0 : i32
    %c0_i32_0 = arith.constant 0 : i32
    return %arg0, %c0_i32 : i32, i32
  }
  func.func @transform_2(%arg0: i32) -> (i32, i32) {
    %c0_i32 = arith.constant 0 : i32
    %c0_i32_0 = arith.constant 0 : i32
    %c0_i32_1 = arith.constant 0 : i32
    return %c0_i32, %c0_i32_0 : i32, i32
  }
  func.func @transform_3(%arg0: i32) -> (i32, i32) {
    %c0_i32 = arith.constant 0 : i32
    %c0_i32_0 = arith.constant 0 : i32
    %c0_i32_1 = arith.constant 0 : i32
    return %c0_i32, %c0_i32_0 : i32, i32
  }
  func.func @transform_4(%arg0: i32) -> (i32, i32) {
    %c0_i32 = arith.constant 0 : i32
    %c0_i32_0 = arith.constant 0 : i32
    return %arg0, %c0_i32 : i32, i32
  }
}

</mosaic_0001>

<bundles_post_ra>
// kernel: qvalue_net_forward.1
= control target key start
LH: loop header
LB: loop body
LE: loop exit
PB: predicated region body
PF: predicated region fallthrough
CT: control target
= control target key end

     0   :  { %9 = vsyncpa [#allocation4], 0  ;;  %s458_s0 = inlined_call_operand.hbm [shape: f32[2,16], index: 0, kind: input, shape index: {}]   ;;  %s459_s1 = inlined_call_operand.hbm [shape: f32[2,4], index: 1, kind: input, shape index: {}]   ;;  %s460_s2 = inlined_call_operand.hbm [shape: bf16[160,128], index: 2, kind: input, shape index: {}]   ;;  %s461_s3 = inlined_call_operand.hbm [shape: f32[3,128], index: 3, kind: input, shape index: {}]   ;;  %s462_s4 = inlined_call_operand.vmem [shape: f32[2,128], index: 4, kind: output, shape index: {}]  }
   0x1   :  { %10 = vsyncpa [#allocation6], 0  ;;  %s28_s17 = sshll.u32 %s459_s1, 4  ;;  %s29_s17 = int_to_ptr.hbm [resolvable:$true] %s28_s17 }
   0x2   :  { %11 = vsyncpa [#allocation9], 0  ;;  %s410_s18 = smov [#allocation5]   ;;  %s17_s22 = sshll.u32 %s458_s0, 4  ;;  %s18_s22 = int_to_ptr.hbm [resolvable:$true] %s17_s22 }
   0x3   :  { %s30_s19 = sshll.u32 %s410_s18, 4  ;;  %s411_s23 = smov [#allocation3]   ;;  %s31_s19 = int_to_ptr.vmem [resolvable:$true] %s30_s19 }
   0x4   :  { %33 = dma.hbm_to_vmem [thread:$0]  %s29_s17, 32, %s31_s19, [#allocation6]  }
   0x5   :  { %s19_s24 = sshll.u32 %s411_s23, 4  ;;  %s38_s27 = sshll.u32 %s460_s2, 4  ;;  %s20_s24 = int_to_ptr.vmem [resolvable:$true] %s19_s24  ;;  %s39_s27 = int_to_ptr.hbm [resolvable:$true] %s38_s27 }
   0x6   :  { %22 = dma.hbm_to_vmem [thread:$0]  %s18_s22, 32, %s20_s24, [#allocation4]  }
   0x7   :  { %s412_s1 = smov [#allocation7]   ;;  %s52_s5 = sshll.u32 %s461_s3, 4  ;;  %s53_s5 = int_to_ptr.hbm [resolvable:$true] %s52_s5 }
   0x8   :  { %s40_s28 = sshll.u32 %s412_s1, 4  ;;  %s413_s6 = smov 64   ;;  %s41_s28 = int_to_ptr.vmem [resolvable:$true] %s40_s28 }
   0x9   :  { %s414_s0 = smov 4   ;;  %s415_s7 = smov [#allocation8]  }
   0xa   :  { %46 = dma.hbm_to_vmem [thread:$0]  %s39_s27, 1280, %s41_s28, [#allocation6], %s413_s6, %s413_s6, %s414_s0  }
   0xb   :  { %s54_s8 = sshll.u32 %s415_s7, 4  ;;  %s55_s8 = int_to_ptr.vmem [resolvable:$true] %s54_s8 }
   0xc   :  { %57 = dma.hbm_to_vmem [thread:$0]  %s53_s5, 64, %s55_s8, [#allocation9]  }
   0xd   :  { %404 = dma.done.wait [#allocation4], 32  }
   0xe   :  { %405 = vsyncadd [#allocation4], 4294967264 }
   0xf   :  { %406 = dma.done.wait [#allocation6], 1312  }
  0x10   :  { %407 = vsyncadd [#allocation6], 4294965984 }
  0x11   :  { %408 = dma.done.wait [#allocation9], 64  }
  0x12   :  { %409 = vsyncadd [#allocation9], 4294967232  ;;  %vm75_vm0 = vcmask 253952   ;;  %v416_v0 = vmov 0   ;;  %vm79_vm1 = vcmask 122880   ;;  %vm85_vm2 = vcmask 1040384  }
  0x13   :  { %76 = vst.msk [vmem:[#allocation2] sm:$0x1] %vm75_vm0, %v416_v0  ;;  %v81_v1 = vld [vmem:[#allocation5] sm:$0x3]  ;;  %v77_v2 = vld [vmem:[#allocation3] sm:$0x3] }
  0x14   :  { %v82_v3 = vpack.c.bf16 %v81_v1, %v81_v1  ;;  %v78_v4 = vpack.c.bf16 %v77_v2, %v77_v2  ;;  %s417_s2 = smov 16   ;;  %v288_v7 = vld [vmem:[#allocation7 + $0x8] sm:$0xff]  ;;  %v287_v8 = vld [vmem:[#allocation7] sm:$0xff]  ;;  %vm93_vm3 = vcmask 155776   ;;  %vm132_vm4 = vcmask 261120   ;;  %v290_v13 = vld [vmem:[#allocation7 + $0x18] sm:$0xff] }
  0x15   :  { %142 = vmatpush.bf16.msra.mxu0 %v288_v7  ;;  %v292_v9 = vld [vmem:[#allocation7 + $0x28] sm:$0xff]  ;;  %v291_v10 = vld [vmem:[#allocation7 + $0x20] sm:$0xff]  ;;  %v289_v14 = vld [vmem:[#allocation7 + $0x10] sm:$0xff]  ;;  %vm176_vm5 = vcmask 523264  }
  0x16   :  { %v84_v5 = vrot.slane %v82_v3, 3  ;;  %80 = vst.msk [vmem:[#allocation2] sm:$0x1] %vm79_vm1, %v78_v4  ;;  %184 = vmatpush.bf16.msra.mxu1 %v292_v9  ;;  %v296_v15 = vld [vmem:[#allocation7 + $0x48] sm:$0xff]  ;;  %v295_v16 = vld [vmem:[#allocation7 + $0x40] sm:$0xff]  ;;  %v294_v23 = vld [vmem:[#allocation7 + $0x38] sm:$0xff] }
  0x17   :  { %227 = vmatpush.bf16.msra.mxu2 %v296_v15  ;;  %v305_v17 = vld [vmem:[#allocation8] ss:$0 sm:$0xff]  ;;  %v306_v25 = vld [vmem:[#allocation8 + $0x1] ss:$0 sm:$0xff]  ;;  %v307_v31 = vld [vmem:[#allocation8 + $0x2] ss:$0 sm:$0xff] }
  0x18   :  { %v88_v6 = vsel %vm85_vm2, %v82_v3, %v84_v5  ;;  %v293_v24 = vld [vmem:[#allocation7 + $0x30] sm:$0xff] }
  0x19   :  { %90 = vrot.lane.b32.xlu0 %v88_v6, %s417_s2  ;;  %143 = vmatpush.bf16.msra.mxu0 %v287_v8 }
  0x1a   :  { %185 = vmatpush.bf16.msra.mxu1 %v291_v10 }
  0x1b   :  { %228 = vmatpush.bf16.msra.mxu2 %v295_v16 }
  0x1e   :  { %186 = vmatpush.bf16.msra.mxu1 %v290_v13 }
  0x1f   :  { %229 = vmatpush.bf16.msra.mxu2 %v294_v23 }
  0x22   :  { %187 = vmatpush.bf16.msra.mxu1 %v289_v14 }
  0x23   :  { %230 = vmatpush.bf16.msra.mxu2 %v293_v24 }
  0x8b   :  { %v91_v11 = vpop.permute.xlu0 %90 }
  0x8c   :  { %94 = vst.msk [vmem:[#allocation2] sm:$0x1] %vm93_vm3, %v91_v11 }
  0x93   :  { %v118_v12 = vld [vmem:[#allocation2] sm:$0x1] }
  0x94   :  { %252 = vmatmul.msk.bf16.vlgmr.msra.gmra.mxu0 %vm132_vm4, %v118_v12 }
 0x111   :  { %v145_v18 = vpop.f32.mrf.mxu0 }
 0x112   :  { %v146_v19 = vadd.f32 %v305_v17, %v145_v18 }
 0x114   :  { %v149_v20 = vmax.f32 %v146_v19, 0.0 }
 0x116   :  { %v150_v21 = vpack.c.bf16 %v149_v20, %v149_v20 }
 0x118   :  { %269 = vmatmul.msk.bf16.vlgmr.msra.gmra.mxu1 %vm176_vm5, %v150_v21 }
 0x119   :  { %v147_v22 = vpop.f32.mrf.mxu0 }
 0x195   :  { %v189_v26 = vpop.f32.mrf.mxu1 }
 0x196   :  { %v190_v27 = vadd.f32 %v306_v25, %v189_v26 }
 0x198   :  { %v193_v28 = vmax.f32 %v190_v27, 0.0 }
 0x19a   :  { %v194_v29 = vpack.c.bf16 %v193_v28, %v193_v28 }
 0x19c   :  { %286 = vmatmul.msk.bf16.vlgmr.msra.gmra.mxu2 %vm176_vm5, %v194_v29 }
 0x19d   :  { %v191_v30 = vpop.f32.mrf.mxu1 }
 0x21f   :  { %v232_v32 = vpop.f32.mrf.mxu2 }
 0x220   :  { %v233_v33 = vadd.f32 %v307_v31, %v232_v32 }
 0x222   :  { %236 = vst [vmem:[%s462_s4] sm:$0x3] %v233_v33 }
 0x227   :  { %v234_v34 = vpop.f32.mrf.mxu2 }
 0x228   :  { %241 = vsyncpa [#allocation4], 1 }
 0x229   :  { %242 = vsyncpa [#allocation6], 1 }
 0x22a   :  { %243 = vsyncpa [#allocation9], 1 }

</bundles_post_ra>
